<compile_context>
chip_gen: v6e
topology: v6e:2x2x1
jax: 0.10.0
libtpu: 0.0.40
codegen_flags: <defaults>
</compile_context>

<pallas_src>
import math

import jax
import jax.numpy as jnp
from jax.experimental import pallas as pl
from jax.experimental.pallas import tpu as pltpu

NEG_SLOPE = 0.01  # nn.LeakyReLU() default negative_slope


def _leaky_relu(x):
    return jnp.where(x >= 0, x, NEG_SLOPE * x)


def _round_up(x, m):
    return ((x + m - 1) // m) * m


def _aggregator_kernel(a_ref, xsrc_ref, xself_ref,
                       w1_ref, b1_ref, w2_ref, b2_ref,
                       out_ref, nh_acc):
    k = pl.program_id(1)

    # ---- K-tiled message passing: accumulate N_h tile = sum_k A[i,k] @ X[k] ----
    @pl.when(k == 0)
    def _():
        nh_acc[...] = jnp.zeros_like(nh_acc)

    nh_acc[...] += jnp.dot(a_ref[...], xsrc_ref[...],
                           preferred_element_type=jnp.float32)

    # ---- finalize on the last K step: bi-interaction + LeakyReLU, single store ----
    @pl.when(k == pl.num_programs(1) - 1)
    def _():
        x = xself_ref[...]
        n_h = nh_acc[...]
        s = x + n_h                      # sum interaction
        p = x * n_h                      # element-wise product interaction

        h1 = jnp.dot(s, w1_ref[...], preferred_element_type=jnp.float32) + b1_ref[...]
        h2 = jnp.dot(p, w2_ref[...], preferred_element_type=jnp.float32) + b2_ref[...]

        out = _leaky_relu(h1) + _leaky_relu(h2)
        # TODO(synk): nn.Dropout(message_dropout) is identity in eval mode; train-mode
        #             stochastic dropout (pltpu.prng_*) not implemented here.
        out_ref[...] = out.astype(out_ref.dtype)


def aggregator_forward(att_adj, entity_embed, w1, b1, w2, b2,
                       *, tile_rows=256, tile_k=512):
    """Bi-interaction KGAT aggregator forward pass.

    att_adj:       (N, N)      float attention-weighted adjacency (dst rows, src cols)
    entity_embed:  (N, in_dim) float node embeddings
    w1, w2:        (out_dim, in_dim)  PyTorch nn.Linear weight layout
    b1, b2:        (out_dim,)
    """
    N, in_dim = entity_embed.shape
    out_dim = w1.shape[0]

    # Lane-dense feature dims (128-aligned) so stores are full vst and the MXU columns
    # are not wasted on small out_dim.
    in_dim_p = _round_up(in_dim, 128)
    out_dim_p = _round_up(out_dim, 128)

    # Tile sizes: multiples of 128, clamped for small graphs.
    n_align = _round_up(N, 128)
    tile_rows = min(tile_rows, n_align)
    tile_k = min(tile_k, n_align)
    assert tile_rows % 128 == 0 and tile_k % 128 == 0
    N_p = _round_up(N, math.lcm(tile_rows, tile_k))

    # --- pad + cast inputs (zero padding contributes nothing; padded rows sliced off) ---
    x32 = jnp.asarray(entity_embed, jnp.float32)
    x_self = jnp.zeros((N_p, in_dim_p), jnp.float32).at[:N, :in_dim].set(x32)
    x_src = x_self.astype(jnp.bfloat16)           # MXU src stream (bandwidth lever)

    a_pad = jnp.zeros((N_p, N_p), jnp.bfloat16).at[:N, :N].set(
        jnp.asarray(att_adj, jnp.float32).astype(jnp.bfloat16))

    w1_t = jnp.zeros((in_dim_p, out_dim_p), jnp.float32).at[:in_dim, :out_dim].set(
        jnp.asarray(w1, jnp.float32).T)
    w2_t = jnp.zeros((in_dim_p, out_dim_p), jnp.float32).at[:in_dim, :out_dim].set(
        jnp.asarray(w2, jnp.float32).T)
    b1_r = jnp.zeros((1, out_dim_p), jnp.float32).at[0, :out_dim].set(
        jnp.asarray(b1, jnp.float32))
    b2_r = jnp.zeros((1, out_dim_p), jnp.float32).at[0, :out_dim].set(
        jnp.asarray(b2, jnp.float32))

    grid = (N_p // tile_rows, N_p // tile_k)

    cost = pl.CostEstimate(
        flops=2 * N_p * N_p * in_dim_p + 4 * N_p * in_dim_p * out_dim_p,
        transcendentals=0,
        bytes_accessed=(N_p * N_p * 2                      # A (bf16), dominant stream
                        + grid[0] * N_p * in_dim_p * 2     # X src re-streamed per row tile
                        + N_p * in_dim_p * 4               # X self (f32)
                        + 2 * in_dim_p * out_dim_p * 4     # W1, W2
                        + 2 * out_dim_p * 4                # b1, b2
                        + N_p * out_dim_p * 4),            # output
    )

    out_p = pl.pallas_call(
        _aggregator_kernel,
        out_shape=jax.ShapeDtypeStruct((N_p, out_dim_p), jnp.float32),
        grid_spec=pltpu.PrefetchScalarGridSpec(
            num_scalar_prefetch=0,
            grid=grid,
            in_specs=[
                pl.BlockSpec((tile_rows, tile_k), lambda i, k: (i, k)),     # A tile (dst, src)
                pl.BlockSpec((tile_k, in_dim_p), lambda i, k: (k, 0)),      # X src tile (bf16)
                pl.BlockSpec((tile_rows, in_dim_p), lambda i, k: (i, 0)),   # X self tile (f32)
                pl.BlockSpec((in_dim_p, out_dim_p), lambda i, k: (0, 0)),   # W1^T
                pl.BlockSpec((1, out_dim_p), lambda i, k: (0, 0)),          # b1
                pl.BlockSpec((in_dim_p, out_dim_p), lambda i, k: (0, 0)),   # W2^T
                pl.BlockSpec((1, out_dim_p), lambda i, k: (0, 0)),          # b2
            ],
            out_specs=pl.BlockSpec((tile_rows, out_dim_p), lambda i, k: (i, 0)),
            scratch_shapes=[pltpu.VMEM((tile_rows, in_dim_p), jnp.float32)],  # N_h accumulator
        ),
        compiler_params=pltpu.CompilerParams(
            dimension_semantics=("parallel", "arbitrary"),
            vmem_limit_bytes=32 * 1024 * 1024),
        cost_estimate=cost,
    )(a_pad, x_src, x_self, w1_t, b1_r, w2_t, b2_r)

    return out_p[:N, :out_dim]


def _reference(att_adj, x, w1, b1, w2, b2):
    n_h = att_adj @ x
    h1 = (x + n_h) @ w1.T + b1
    h2 = (x * n_h) @ w2.T + b2
    return _leaky_relu(h1) + _leaky_relu(h2)


if __name__ == "__main__":
    # Small synthetic problem consistent with the module: N nodes, in_dim -> out_dim.
    N, in_dim, out_dim = 128, 32, 32

    key = jax.random.PRNGKey(0)
    k_x, k_a, k_m, k_w1, k_b1, k_w2, k_b2 = jax.random.split(key, 7)

    entity_embed = jax.random.normal(k_x, (N, in_dim), dtype=jnp.float32)

    # Sparse-ish nonnegative attention adjacency (row-normalized like DGL softmax attention).
    raw = jax.random.uniform(k_a, (N, N), dtype=jnp.float32)
    mask = (jax.random.uniform(k_m, (N, N)) < 0.1).astype(jnp.float32)
    att = raw * mask
    att = att / jnp.maximum(att.sum(axis=1, keepdims=True), 1e-6)

    # Deterministic nn.Linear-style parameters (W: (out_dim, in_dim), b: (out_dim,)).
    bound = 1.0 / jnp.sqrt(in_dim)
    w1 = jax.random.uniform(k_w1, (out_dim, in_dim), minval=-bound, maxval=bound)
    b1 = jax.random.uniform(k_b1, (out_dim,), minval=-bound, maxval=bound)
    w2 = jax.random.uniform(k_w2, (out_dim, in_dim), minval=-bound, maxval=bound)
    b2 = jax.random.uniform(k_b2, (out_dim,), minval=-bound, maxval=bound)

    out = aggregator_forward(att, entity_embed, w1, b1, w2, b2)
    out = jax.block_until_ready(out)

    ref = _reference(att, entity_embed, w1, b1, w2, b2)
    assert out.shape == (N, out_dim)
    # Kernel streams A / X-src in bf16 (f32 accumulate) -> relaxed tolerance vs f32 reference.
    assert jnp.allclose(out, ref, atol=2e-2, rtol=2e-2), "mismatch vs. JAX reference"

    print("KERNEL_OK")
</pallas_src>

<mosaic_0001>
module attributes {stable_mosaic.version = 11 : i64} {
  func.func @_aggregator_kernel(%arg0: i32, %arg1: i32, %arg2: memref<128x128xbf16, #tpu.memory_space<vmem>>, %arg3: memref<128x128xbf16, #tpu.memory_space<vmem>>, %arg4: memref<128x128xf32, #tpu.memory_space<vmem>>, %arg5: memref<128x128xf32, #tpu.memory_space<vmem>>, %arg6: memref<1x128xf32, #tpu.memory_space<vmem>>, %arg7: memref<128x128xf32, #tpu.memory_space<vmem>>, %arg8: memref<1x128xf32, #tpu.memory_space<vmem>>, %arg9: memref<128x128xf32, #tpu.memory_space<vmem>>, %arg10: memref<128x128xf32, #tpu.memory_space<vmem>>) attributes {dimension_semantics = [#tpu.dimension_semantics<parallel>, #tpu.dimension_semantics<arbitrary>], iteration_bounds = array<i64: 1, 1>, scalar_prefetch = 0 : i64, scratch_operands = 1 : i64, tpu.core_type = #tpu.core_type<tc>, window_params = [{transform_indices = @transform_0, window_bounds = array<i64: 128, 128>}, {transform_indices = @transform_1, window_bounds = array<i64: 128, 128>}, {transform_indices = @transform_2, window_bounds = array<i64: 128, 128>}, {pipeline_mode = #tpu.pipeline_mode<synchronous>, transform_indices = @transform_3, window_bounds = array<i64: 128, 128>}, {pipeline_mode = #tpu.pipeline_mode<synchronous>, transform_indices = @transform_4, window_bounds = array<i64: 1, 128>}, {pipeline_mode = #tpu.pipeline_mode<synchronous>, transform_indices = @transform_5, window_bounds = array<i64: 128, 128>}, {pipeline_mode = #tpu.pipeline_mode<synchronous>, transform_indices = @transform_6, window_bounds = array<i64: 1, 128>}, {transform_indices = @transform_7, window_bounds = array<i64: 128, 128>}]} {
    %c0_i32 = arith.constant 0 : i32
    %0 = arith.cmpi eq, %arg1, %c0_i32 : i32
    %1 = arith.extui %0 : i1 to i32
    %c0_i32_0 = arith.constant 0 : i32
    %2 = arith.cmpi ne, %1, %c0_i32_0 : i32
    scf.if %2 {
      %cst_10 = arith.constant 0.000000e+00 : f32
      %12 = vector.broadcast %cst_10 : f32 to vector<128x128xf32>
      %c0_11 = arith.constant 0 : index
      %c0_12 = arith.constant 0 : index
      %13 = vector.load %arg10[%c0_11, %c0_12] : memref<128x128xf32, #tpu.memory_space<vmem>>, vector<128x128xf32>
      tpu.vector_store %arg10[%c0_11, %c0_12], %12 {strides = array<i32>} : memref<128x128xf32, #tpu.memory_space<vmem>>, vector<128x128xf32>,
    } else {
    }
    %c0 = arith.constant 0 : index
    %c0_1 = arith.constant 0 : index
    %3 = vector.load %arg10[%c0, %c0_1] : memref<128x128xf32, #tpu.memory_space<vmem>>, vector<128x128xf32>
    %c0_2 = arith.constant 0 : index
    %c0_3 = arith.constant 0 : index
    %4 = vector.load %arg2[%c0_2, %c0_3] : memref<128x128xbf16, #tpu.memory_space<vmem>>, vector<128x128xbf16>
    %c0_4 = arith.constant 0 : index
    %c0_5 = arith.constant 0 : index
    %5 = vector.load %arg3[%c0_4, %c0_5] : memref<128x128xbf16, #tpu.memory_space<vmem>>, vector<128x128xbf16>
    %cst = arith.constant dense<0.000000e+00> : vector<128x128xf32>
    %6 = tpu.matmul %4, %5, %cst {dimension_numbers = #tpu.dot_dimension_numbers<[1], [0], [0], [1], [0, 0, 1, 1], [], []>} : vector<128x128xbf16>, vector<128x128xbf16>, vector<128x128xf32> -> vector<128x128xf32>
    %7 = arith.addf %3, %6 : vector<128x128xf32>
    %c0_6 = arith.constant 0 : index
    %c0_7 = arith.constant 0 : index
    %8 = vector.load %arg10[%c0_6, %c0_7] : memref<128x128xf32, #tpu.memory_space<vmem>>, vector<128x128xf32>
    tpu.vector_store %arg10[%c0_6, %c0_7], %7 {strides = array<i32>} : memref<128x128xf32, #tpu.memory_space<vmem>>, vector<128x128xf32>,
    %c0_i32_8 = arith.constant 0 : i32
    %9 = arith.cmpi eq, %arg1, %c0_i32_8 : i32
    %10 = arith.extui %9 : i1 to i32
    %c0_i32_9 = arith.constant 0 : i32
    %11 = arith.cmpi ne, %10, %c0_i32_9 : i32
    scf.if %11 {
      %c0_10 = arith.constant 0 : index
      %c0_11 = arith.constant 0 : index
      %12 = vector.load %arg4[%c0_10, %c0_11] : memref<128x128xf32, #tpu.memory_space<vmem>>, vector<128x128xf32>
      %c0_12 = arith.constant 0 : index
      %c0_13 = arith.constant 0 : index
      %13 = vector.load %arg10[%c0_12, %c0_13] : memref<128x128xf32, #tpu.memory_space<vmem>>, vector<128x128xf32>
      %14 = arith.addf %12, %13 : vector<128x128xf32>
      %15 = arith.mulf %12, %13 : vector<128x128xf32>
      %c0_14 = arith.constant 0 : index
      %c0_15 = arith.constant 0 : index
      %16 = vector.load %arg5[%c0_14, %c0_15] : memref<128x128xf32, #tpu.memory_space<vmem>>, vector<128x128xf32>
      %cst_16 = arith.constant dense<0.000000e+00> : vector<128x128xf32>
      %17 = tpu.matmul %14, %16, %cst_16 {dimension_numbers = #tpu.dot_dimension_numbers<[1], [0], [0], [1], [0, 0, 1, 1], [], []>} : vector<128x128xf32>, vector<128x128xf32>, vector<128x128xf32> -> vector<128x128xf32>
      %c0_17 = arith.constant 0 : index
      %c0_18 = arith.constant 0 : index
      %18 = vector.load %arg6[%c0_17, %c0_18] : memref<1x128xf32, #tpu.memory_space<vmem>>, vector<1x128xf32>
      %19 = vector.broadcast %18 : vector<1x128xf32> to vector<128x128xf32>
      %20 = arith.addf %17, %19 : vector<128x128xf32>
      %c0_19 = arith.constant 0 : index
      %c0_20 = arith.constant 0 : index
      %21 = vector.load %arg7[%c0_19, %c0_20] : memref<128x128xf32, #tpu.memory_space<vmem>>, vector<128x128xf32>
      %cst_21 = arith.constant dense<0.000000e+00> : vector<128x128xf32>
      %22 = tpu.matmul %15, %21, %cst_21 {dimension_numbers = #tpu.dot_dimension_numbers<[1], [0], [0], [1], [0, 0, 1, 1], [], []>} : vector<128x128xf32>, vector<128x128xf32>, vector<128x128xf32> -> vector<128x128xf32>
      %c0_22 = arith.constant 0 : index
      %c0_23 = arith.constant 0 : index
      %23 = vector.load %arg8[%c0_22, %c0_23] : memref<1x128xf32, #tpu.memory_space<vmem>>, vector<1x128xf32>
      %24 = vector.broadcast %23 : vector<1x128xf32> to vector<128x128xf32>
      %25 = arith.addf %22, %24 : vector<128x128xf32>
      %cst_24 = arith.constant 0.000000e+00 : f32
      %26 = vector.broadcast %cst_24 : f32 to vector<128x128xf32>
      %27 = arith.cmpf oge, %20, %26 : vector<128x128xf32>
      %cst_25 = arith.constant 0.00999999977 : f32
      %28 = vector.broadcast %cst_25 : f32 to vector<128x128xf32>
      %29 = arith.mulf %28, %20 : vector<128x128xf32>
      %30 = arith.select %27, %20, %29 : vector<128x128xi1>, vector<128x128xf32>
      %cst_26 = arith.constant 0.000000e+00 : f32
      %31 = vector.broadcast %cst_26 : f32 to vector<128x128xf32>
      %32 = arith.cmpf oge, %25, %31 : vector<128x128xf32>
      %cst_27 = arith.constant 0.00999999977 : f32
      %33 = vector.broadcast %cst_27 : f32 to vector<128x128xf32>
      %34 = arith.mulf %33, %25 : vector<128x128xf32>
      %35 = arith.select %32, %25, %34 : vector<128x128xi1>, vector<128x128xf32>
      %36 = arith.addf %30, %35 : vector<128x128xf32>
      %c0_28 = arith.constant 0 : index
      %c0_29 = arith.constant 0 : index
      %37 = vector.load %arg9[%c0_28, %c0_29] : memref<128x128xf32, #tpu.memory_space<vmem>>, vector<128x128xf32>
      tpu.vector_store %arg9[%c0_28, %c0_29], %36 {strides = array<i32>} : memref<128x128xf32, #tpu.memory_space<vmem>>, vector<128x128xf32>,
    } else {
    }
    return
  }
  func.func @transform_0(%arg0: i32, %arg1: i32) -> (i32, i32) {
    %c0_i32 = arith.constant 0 : i32
    return %arg0, %arg1 : i32, i32
  }
  func.func @transform_1(%arg0: i32, %arg1: i32) -> (i32, i32) {
    %c0_i32 = arith.constant 0 : i32
    %c0_i32_0 = arith.constant 0 : i32
    return %arg1, %c0_i32 : i32, i32
  }
  func.func @transform_2(%arg0: i32, %arg1: i32) -> (i32, i32) {
    %c0_i32 = arith.constant 0 : i32
    %c0_i32_0 = arith.constant 0 : i32
    return %arg0, %c0_i32 : i32, i32
  }
  func.func @transform_3(%arg0: i32, %arg1: i32) -> (i32, i32) {
    %c0_i32 = arith.constant 0 : i32
    %c0_i32_0 = arith.constant 0 : i32
    %c0_i32_1 = arith.constant 0 : i32
    return %c0_i32, %c0_i32_0 : i32, i32
  }
  func.func @transform_4(%arg0: i32, %arg1: i32) -> (i32, i32) {
    %c0_i32 = arith.constant 0 : i32
    %c0_i32_0 = arith.constant 0 : i32
    %c0_i32_1 = arith.constant 0 : i32
    return %c0_i32, %c0_i32_0 : i32, i32
  }
  func.func @transform_5(%arg0: i32, %arg1: i32) -> (i32, i32) {
    %c0_i32 = arith.constant 0 : i32
    %c0_i32_0 = arith.constant 0 : i32
    %c0_i32_1 = arith.constant 0 : i32
    return %c0_i32, %c0_i32_0 : i32, i32
  }
  func.func @transform_6(%arg0: i32, %arg1: i32) -> (i32, i32) {
    %c0_i32 = arith.constant 0 : i32
    %c0_i32_0 = arith.constant 0 : i32
    %c0_i32_1 = arith.constant 0 : i32
    return %c0_i32, %c0_i32_0 : i32, i32
  }
  func.func @transform_7(%arg0: i32, %arg1: i32) -> (i32, i32) {
    %c0_i32 = arith.constant 0 : i32
    %c0_i32_0 = arith.constant 0 : i32
    return %arg0, %c0_i32 : i32, i32
  }
}

</mosaic_0001>

<bundles_post_ra>
// kernel: tpu_custom_call.1
= control target key start
LH: loop header
LB: loop body
LE: loop exit
PB: predicated region body
PF: predicated region fallthrough
CT: control target
= control target key end

     0   :  { %12 = vsyncpa [#allocation4], 0  ;;  %s1592_s0 = inlined_call_operand.hbm [shape: bf16[128,128], index: 0, kind: input, shape index: {}]   ;;  %s1593_s1 = inlined_call_operand.hbm [shape: bf16[128,128], index: 1, kind: input, shape index: {}]   ;;  %s1594_s2 = inlined_call_operand.hbm [shape: f32[128,128], index: 2, kind: input, shape index: {}]   ;;  %s1595_s3 = inlined_call_operand.hbm [shape: f32[128,128], index: 3, kind: input, shape index: {}]   ;;  %s1596_s4 = inlined_call_operand.vmem [shape: f32[1,128], index: 4, kind: input, shape index: {}]   ;;  %s1597_s5 = inlined_call_operand.hbm [shape: f32[128,128], index: 5, kind: input, shape index: {}]   ;;  %s1598_s6 = inlined_call_operand.vmem [shape: f32[1,128], index: 6, kind: input, shape index: {}]   ;;  %s1599_s7 = inlined_call_operand.hbm [shape: f32[128,128], index: 7, kind: output, shape index: {}]  }
   0x1   :  { %13 = vsyncpa [#allocation7], 0 }
   0x2   :  { %14 = vsyncpa [#allocation10], 0 }
   0x3   :  { %15 = vsyncpa [#allocation5], 0  ;;  %s1367_s24 = smov [#allocation6]  }
   0x4   :  { %s33_s25 = sshll.u32 %s1367_s24, 4  ;;  %s34_s25 = int_to_ptr.vmem [resolvable:$true] %s33_s25 }
   0x5   :  { %s1247_s26 = scalar_lea.vmem %s34_s25, 1024  ;;  %p1252_p1 = scmp.lt.s32.totalorder %s34_s25, %s34_s25 }
   0x6   :  { %p1248_p0 = scmp.ne.s32.totalorder %s34_s25, %s1247_s26  ;;  %p1253_p2 = scmp.lt.s32.totalorder %s1247_s26, %s1247_s26 }
   0x8   :  { %p1254_p3 = por %p1253_p2, %p1252_p1 }
   0xa   :  { %p1255_p4 = pnand %p1254_p3, %p1248_p0 }
   0xc   :  { %1258 = shalt.err (!%p1255_p4)
}
   0xd   :  { %s1368_s27 = smov 64   ;;  %s1369_s28 = smov 4  }
   0xe   :  { %39 = dma.hbm_to_vmem [thread:$0]  %s1593_s1, 1024, %s34_s25, [#allocation7], %s1368_s27, %s1368_s27, %s1369_s28  }
   0xf   :  { %s1370_s8 = smov [#allocation9]   ;;  %s1371_s10 = smov [#allocation3]  }
  0x10   :  { %s57_s9 = sshll.u32 %s1370_s8, 4  ;;  %s21_s11 = sshll.u32 %s1371_s10, 4  ;;  %s58_s9 = int_to_ptr.vmem [resolvable:$true] %s57_s9  ;;  %s22_s11 = int_to_ptr.vmem [resolvable:$true] %s21_s11 }
  0x11   :  { %s1267_s12 = scalar_lea.vmem %s58_s9, 2048  ;;  %p1272_p6 = scmp.lt.s32.totalorder %s58_s9, %s58_s9 }
  0x12   :  { %p1268_p5 = scmp.ne.s32.totalorder %s58_s9, %s1267_s12  ;;  %p1273_p7 = scmp.lt.s32.totalorder %s1267_s12, %s1267_s12 }
  0x14   :  { %p1274_p8 = por %p1273_p7, %p1272_p6 }
  0x16   :  { %p1275_p9 = pnand %p1274_p8, %p1268_p5 }
  0x18   :  { %1278 = shalt.err (!%p1275_p9)
}
  0x19   :  { %s1372_s13 = smov 128   ;;  %s1373_s14 = smov 8  }
  0x1a   :  { %63 = dma.hbm_to_vmem [thread:$0]  %s1595_s3, 2048, %s58_s9, [#allocation10], %s1372_s13, %s1372_s13, %s1373_s14  }
  0x1b   :  { %s1287_s1 = scalar_lea.vmem %s22_s11, 1024  ;;  %p1292_p11 = scmp.lt.s32.totalorder %s22_s11, %s22_s11 }
  0x1c   :  { %p1288_p10 = scmp.ne.s32.totalorder %s22_s11, %s1287_s1  ;;  %p1293_p12 = scmp.lt.s32.totalorder %s1287_s1, %s1287_s1 }
  0x1e   :  { %p1294_p13 = por %p1293_p12, %p1292_p11 }
  0x20   :  { %p1295_p0 = pnand %p1294_p13, %p1288_p10 }
  0x22   :  { %1298 = shalt.err (!%p1295_p0)
}
  0x23   :  { %27 = dma.hbm_to_vmem [thread:$0]  %s1592_s0, 1024, %s22_s11, [#allocation4], %s1368_s27, %s1368_s27, %s1369_s28  }
  0x24   :  { %s1374_s19 = smov [#allocation8]   ;;  %s1375_s21 = smov [#allocation11]  }
  0x25   :  { %s45_s20 = sshll.u32 %s1374_s19, 4  ;;  %s71_s22 = sshll.u32 %s1375_s21, 4  ;;  %s46_s20 = int_to_ptr.vmem [resolvable:$true] %s45_s20  ;;  %s72_s22 = int_to_ptr.vmem [resolvable:$true] %s71_s22 }
  0x26   :  { %s1307_s23 = scalar_lea.vmem %s46_s20, 2048  ;;  %p1312_p2 = scmp.lt.s32.totalorder %s46_s20, %s46_s20 }
  0x27   :  { %p1308_p1 = scmp.ne.s32.totalorder %s46_s20, %s1307_s23  ;;  %p1313_p3 = scmp.lt.s32.totalorder %s1307_s23, %s1307_s23 }
  0x29   :  { %p1314_p4 = por %p1313_p3, %p1312_p2 }
  0x2b   :  { %p1315_p5 = pnand %p1314_p4, %p1308_p1 }
  0x2d   :  { %1318 = shalt.err (!%p1315_p5)
}
  0x2e   :  { %51 = dma.hbm_to_vmem [thread:$0]  %s1594_s2, 2048, %s46_s20, [#allocation7], %s1372_s13, %s1372_s13, %s1373_s14  }
  0x2f   :  { %s1327_s0 = scalar_lea.vmem %s72_s22, 2048  ;;  %p1332_p7 = scmp.lt.s32.totalorder %s72_s22, %s72_s22 }
  0x30   :  { %p1328_p6 = scmp.ne.s32.totalorder %s72_s22, %s1327_s0  ;;  %p1333_p8 = scmp.lt.s32.totalorder %s1327_s0, %s1327_s0 }
  0x32   :  { %p1334_p9 = por %p1333_p8, %p1332_p7 }
  0x34   :  { %p1335_p10 = pnand %p1334_p9, %p1328_p6 }
  0x36   :  { %1338 = shalt.err (!%p1335_p10)
}
  0x37   :  { %77 = dma.hbm_to_vmem [thread:$0]  %s1597_s5, 2048, %s72_s22, [#allocation10], %s1372_s13, %s1372_s13, %s1373_s14  }
  0x38   :  { %1359 = dma.done.wait [#allocation4], 1024  }
  0x39   :  { %1360 = vsyncadd [#allocation4], 4294966272 }
  0x3a   :  { %1361 = dma.done.wait [#allocation7], 3072  }
  0x3b   :  { %1362 = vsyncadd [#allocation7], 4294964224 }
  0x3c   :  { %1363 = dma.done.wait [#allocation10], 4096  }
  0x3d   :  { %1364 = vsyncadd [#allocation10], 4294963200  ;;  %v1223_v0 = vld [vmem:[#allocation6 + $0x38] sm:$0xff]   ;;  %v1224_v1 = vld [vmem:[#allocation6 + $0x30] sm:$0xff]  }
  0x3e   :  { %1037 = vmatprep.subr.bf16.mxu0 %v1223_v0  ;;  %v1225_v2 = vld [vmem:[#allocation6 + $0x28] sm:$0xff]   ;;  %v1226_v3 = vld [vmem:[#allocation6 + $0x20] sm:$0xff]   ;;  %v1227_v5 = vld [vmem:[#allocation6 + $0x18] sm:$0xff]  }
  0x3f   :  { %1038 = vmatpush3.bf16.msra.mxu0 %v1223_v0  ;;  %v1231_v4 = vld [vmem:[#allocation3] sm:$0xff]   ;;  %v1228_v6 = vld [vmem:[#allocation6 + $0x10] sm:$0xff]   ;;  %v471_v7 = vld [vmem:[#allocation9 + $0x78] sm:$0xff] }
  0x40   :  { %1039 = vmatprep.subr.bf16.mxu0 %v1224_v1  ;;  %1053 = vmatprep.mubr.bf16.mxu0 %v1231_v4  ;;  %v470_v8 = vld [vmem:[#allocation9 + $0x70] sm:$0xff]  ;;  %v469_v9 = vld [vmem:[#allocation9 + $0x68] sm:$0xff]  ;;  %v468_v11 = vld [vmem:[#allocation9 + $0x60] sm:$0xff] }
  0x41   :  { %1069 = vmatprep.subr.mxu1 %v471_v7  ;;  %v1229_v10 = vld [vmem:[#allocation6 + $0x8] sm:$0xff]   ;;  %v467_v12 = vld [vmem:[#allocation9 + $0x58] sm:$0xff]  ;;  %v1230_v13 = vld [vmem:[#allocation6] sm:$0xff]  }
  0x42   :  { %1070 = vmatpush3.msra.mxu1 %v471_v7  ;;  %v466_v14 = vld [vmem:[#allocation9 + $0x50] sm:$0xff]  ;;  %v465_v15 = vld [vmem:[#allocation9 + $0x48] sm:$0xff]  ;;  %v464_v16 = vld [vmem:[#allocation9 + $0x40] sm:$0xff] }
  0x43   :  { %1040 = vmatpush3.bf16.msra.mxu0 %v1224_v1  ;;  %1071 = vmatprep.subr.mxu1 %v470_v8  ;;  %v1441_v17 = vld [vmem:[#allocation11 + $0x78] sm:$0xff]  ;;  %v1232_v18 = vld [vmem:[#allocation3 + $0x8] sm:$0xff]   ;;  %v1233_v20 = vld [vmem:[#allocation3 + $0x10] sm:$0xff]  }
  0x44   :  { %1041 = vmatprep.subr.bf16.mxu0 %v1225_v2  ;;  %1072 = vmatpush3.msra.mxu1 %v470_v8  ;;  %v463_v19 = vld [vmem:[#allocation9 + $0x38] sm:$0xff]  ;;  %v1444_v21 = vld [vmem:[#allocation11 + $0x70] sm:$0xff]  ;;  %v1447_v23 = vld [vmem:[#allocation11 + $0x68] sm:$0xff] }
  0x45   :  { %1073 = vmatprep.subr.mxu1 %v469_v9  ;;  %v462_v22 = vld [vmem:[#allocation9 + $0x30] sm:$0xff]  ;;  %v461_v24 = vld [vmem:[#allocation9 + $0x28] sm:$0xff]  ;;  %v1451_v25 = vld [vmem:[#allocation11 + $0x60] sm:$0xff] }
  0x46   :  { %1074 = vmatpush3.msra.mxu1 %v469_v9  ;;  %v460_v26 = vld [vmem:[#allocation9 + $0x20] sm:$0xff]  ;;  %v1234_v27 = vld [vmem:[#allocation3 + $0x18] sm:$0xff]   ;;  %v1459_v30 = vld [vmem:[#allocation11 + $0x50] sm:$0xff] }
  0x47   :  { %1042 = vmatpush3.bf16.msra.mxu0 %v1225_v2  ;;  %1075 = vmatprep.subr.mxu1 %v468_v11  ;;  %v1235_v28 = vld [vmem:[#allocation3 + $0x20] sm:$0xff]   ;;  %v1455_v29 = vld [vmem:[#allocation11 + $0x58] sm:$0xff]  ;;  %v1463_v31 = vld [vmem:[#allocation11 + $0x48] sm:$0xff] }
  0x48   :  { %1043 = vmatprep.subr.bf16.mxu0 %v1226_v3  ;;  %1076 = vmatpush3.msra.mxu1 %v468_v11  ;;  %v1467_v32 = vld [vmem:[#allocation11 + $0x40] sm:$0xff]  ;;  %v1236_v33 = vld [vmem:[#allocation3 + $0x28] sm:$0xff]   ;;  %v1237_v34 = vld [vmem:[#allocation3 + $0x30] sm:$0xff]  }
  0x49   :  { %1077 = vmatprep.subr.mxu1 %v467_v12  ;;  %v1471_v35 = vld [vmem:[#allocation11 + $0x38] sm:$0xff]  ;;  %v1475_v36 = vld [vmem:[#allocation11 + $0x30] sm:$0xff]  ;;  %v1479_v37 = vld [vmem:[#allocation11 + $0x28] sm:$0xff] }
  0x4a   :  { %1078 = vmatpush3.msra.mxu1 %v467_v12  ;;  %v1483_v38 = vld [vmem:[#allocation11 + $0x20] sm:$0xff]  ;;  %v1238_v39 = vld [vmem:[#allocation3 + $0x38] sm:$0xff]   ;;  %v458_v42 = vld [vmem:[#allocation9 + $0x10] sm:$0xff] }
  0x4b   :  { %1044 = vmatpush3.bf16.msra.mxu0 %v1226_v3  ;;  %1079 = vmatprep.subr.mxu1 %v466_v14  ;;  %v459_v40 = vld [vmem:[#allocation9 + $0x18] sm:$0xff]  ;;  %v1493_v43 = vld [vmem:[#allocation11 + $0x10] sm:$0xff]  ;;  %v457_v44 = vld [vmem:[#allocation9 + $0x8] sm:$0xff] }
  0x4c   :  { %1045 = vmatprep.subr.bf16.mxu0 %v1227_v5  ;;  %1080 = vmatpush3.msra.mxu1 %v466_v14  ;;  %v1489_v41 = vld [vmem:[#allocation11 + $0x18] sm:$0xff]  ;;  %v1497_v45 = vld [vmem:[#allocation11 + $0x8] sm:$0xff]  ;;  %v456_v46 = vld [vmem:[#allocation9] sm:$0xff] }
  0x4d   :  { %1081 = vmatprep.subr.mxu1 %v465_v15  ;;  %v1501_v47 = vld [vmem:[#allocation11] sm:$0xff]  ;;  %v393_v54 = vld [vmem:[#allocation8 + $0x8] sm:$0xff]  ;;  %v394_v55 = vld [vmem:[#allocation8 + $0x10] sm:$0xff] }
  0x4e   :  { %1082 = vmatpush3.msra.mxu1 %v465_v15  ;;  %v392_v49 = vld [vmem:[#allocation8] sm:$0xff]  ;;  %v395_v60 = vld [vmem:[#allocation8 + $0x18] sm:$0xff]  ;;  %v398_v7 = vld [vmem:[#allocation8 + $0x30] sm:$0xff] }
  0x4f   :  { %1046 = vmatpush3.bf16.msra.mxu0 %v1227_v5  ;;  %1083 = vmatprep.subr.mxu1 %v464_v16  ;;  %v396_v62 = vld [vmem:[#allocation8 + $0x20] sm:$0xff]  ;;  %v399_v11 = vld [vmem:[#allocation8 + $0x38] sm:$0xff] }
  0x50   :  { %1047 = vmatprep.subr.bf16.mxu0 %v1228_v6  ;;  %1084 = vmatpush3.msra.mxu1 %v464_v16 }
  0x51   :  { %1085 = vmatprep.subr.mxu1 %v463_v19 }
  0x52   :  { %1086 = vmatpush3.msra.mxu1 %v463_v19 }
  0x53   :  { %1048 = vmatpush3.bf16.msra.mxu0 %v1228_v6  ;;  %1087 = vmatprep.subr.mxu1 %v462_v22  ;;  %v397_v6 = vld [vmem:[#allocation8 + $0x28] sm:$0xff] }
  0x54   :  { %1049 = vmatprep.subr.bf16.mxu0 %v1229_v10  ;;  %1088 = vmatpush3.msra.mxu1 %v462_v22  ;;  %v402_v22 = vld [vmem:[#allocation8 + $0x50] sm:$0xff] }
  0x55   :  { %1089 = vmatprep.subr.mxu1 %v461_v24 }
  0x56   :  { %1090 = vmatpush3.msra.mxu1 %v461_v24 }
  0x57   :  { %1050 = vmatpush3.bf16.msra.mxu0 %v1229_v10  ;;  %1091 = vmatprep.subr.mxu1 %v460_v26 }
  0x58   :  { %1051 = vmatprep.subr.bf16.mxu0 %v1230_v13  ;;  %1092 = vmatpush3.msra.mxu1 %v460_v26  ;;  %v403_v26 = vld [vmem:[#allocation8 + $0x58] sm:$0xff] }
  0x59   :  { %1093 = vmatprep.subr.mxu1 %v459_v40 }
  0x5a   :  { %1094 = vmatpush3.msra.mxu1 %v459_v40 }
  0x5b   :  { %1052 = vmatpush3.bf16.msra.mxu0 %v1230_v13  ;;  %1095 = vmatprep.subr.mxu1 %v458_v42  ;;  %v400_v13 = vld [vmem:[#allocation8 + $0x40] sm:$0xff] }
  0x5c   :  { %1125 = vmatprep.subr.mxu0 %v1441_v17  ;;  %1096 = vmatpush3.msra.mxu1 %v458_v42  ;;  %v407_v42 = vld [vmem:[#allocation8 + $0x78] sm:$0xff] }
  0x5d   :  { %1097 = vmatprep.subr.mxu1 %v457_v44 }
  0x5e   :  { %1054 = vmatmul.mubr.bf16.vlgmr.msra.gmra.mxu0 %v1232_v18  ;;  %1098 = vmatpush3.msra.mxu1 %v457_v44 }
  0x5f   :  { %1057 = vmatprep.mubr.bf16.mxu0 %v1233_v20  ;;  %1126 = vmatpush3.msra.mxu0 %v1441_v17 }
  0x60   :  { %1127 = vmatprep.subr.mxu0 %v1444_v21  ;;  %1099 = vmatprep.subr.mxu1 %v456_v46 }
  0x61   :  { %1128 = vmatpush3.msra.mxu0 %v1444_v21  ;;  %1100 = vmatpush3.msra.mxu1 %v456_v46 }
  0x62   :  { %1129 = vmatprep.subr.mxu0 %v1447_v23  ;;  %1181 = vmatprep.subr.mxu1 %v1441_v17 }
  0x63   :  { %1130 = vmatpush3.msra.mxu0 %v1447_v23 }
  0x64   :  { %1131 = vmatprep.subr.mxu0 %v1451_v25 }
  0x65   :  { %1132 = vmatpush3.msra.mxu0 %v1451_v25 }
  0x66   :  { %1058 = vmatmul.mubr.bf16.gmra.mxu0 %v1234_v27  ;;  %1133 = vmatprep.subr.mxu0 %v1455_v29 }
  0x67   :  { %1061 = vmatprep.mubr.bf16.mxu0 %v1235_v28  ;;  %1134 = vmatpush3.msra.mxu0 %v1455_v29  ;;  %v404_v28 = vld [vmem:[#allocation8 + $0x60] sm:$0xff] }
  0x68   :  { %1135 = vmatprep.subr.mxu0 %v1459_v30 }
  0x69   :  { %1136 = vmatpush3.msra.mxu0 %v1459_v30 }
  0x6a   :  { %1137 = vmatprep.subr.mxu0 %v1463_v31 }
  0x6b   :  { %1138 = vmatpush3.msra.mxu0 %v1463_v31 }
  0x6c   :  { %1139 = vmatprep.subr.mxu0 %v1467_v32 }
  0x6d   :  { %1140 = vmatpush3.msra.mxu0 %v1467_v32 }
  0x6e   :  { %1062 = vmatmul.mubr.bf16.gmra.mxu0 %v1236_v33  ;;  %1141 = vmatprep.subr.mxu0 %v1471_v35 }
  0x6f   :  { %1065 = vmatprep.mubr.bf16.mxu0 %v1237_v34  ;;  %1142 = vmatpush3.msra.mxu0 %v1471_v35  ;;  %v405_v34 = vld [vmem:[#allocation8 + $0x68] sm:$0xff] }
  0x70   :  { %1143 = vmatprep.subr.mxu0 %v1475_v36 }
  0x71   :  { %1144 = vmatpush3.msra.mxu0 %v1475_v36 }
  0x72   :  { %1145 = vmatprep.subr.mxu0 %v1479_v37 }
  0x73   :  { %1146 = vmatpush3.msra.mxu0 %v1479_v37 }
  0x74   :  { %1147 = vmatprep.subr.mxu0 %v1483_v38 }
  0x75   :  { %1148 = vmatpush3.msra.mxu0 %v1483_v38 }
  0x76   :  { %1066 = vmatmul.mubr.bf16.gmra.mxu0 %v1238_v39  ;;  %1149 = vmatprep.subr.mxu0 %v1489_v41  ;;  %v406_v39 = vld [vmem:[#allocation8 + $0x70] sm:$0xff] }
  0x77   :  { %1150 = vmatpush3.msra.mxu0 %v1489_v41 }
  0x78   :  { %1151 = vmatprep.subr.mxu0 %v1493_v43 }
  0x79   :  { %1152 = vmatpush3.msra.mxu0 %v1493_v43 }
  0x7a   :  { %1153 = vmatprep.subr.mxu0 %v1497_v45 }
  0x7b   :  { %1154 = vmatpush3.msra.mxu0 %v1497_v45 }
  0x7c   :  { %1155 = vmatprep.subr.mxu0 %v1501_v47 }
  0x7d   :  { %1156 = vmatpush3.msra.mxu0 %v1501_v47 }
 0x11e   :  { %v1055_v48 = vpop.f32.mrf.mxu0 }
 0x11f   :  { %v426_v59 = vadd.f32 %v1055_v48, %v394_v55  ;;  %v442_v63 = vmul.f32 %v1055_v48, %v394_v55 }
 0x120   :  { %v294_v50 = vpop.f32.mrf.mxu0 }
 0x121   :  { %v424_v51 = vadd.f32 %v392_v49, %v294_v50  ;;  %v440_v52 = vmul.f32 %v392_v49, %v294_v50 }
 0x122   :  { %v1056_v53 = vpop.f32.mrf.mxu0 }
 0x123   :  { %1101 = vmatprep.mubr.f32.mxu1 %v424_v51  ;;  %1157 = vmatprep.mubr.f32.mxu0 %v440_v52  ;;  %v427_v1 = vadd.f32 %v1056_v53, %v395_v60  ;;  %v443_v3 = vmul.f32 %v1056_v53, %v395_v60 }
 0x124   :  { %v297_v56 = vpop.f32.mrf.mxu0 }
 0x125   :  { %v425_v57 = vadd.f32 %v393_v54, %v297_v56  ;;  %v441_v58 = vmul.f32 %v393_v54, %v297_v56 }
 0x126   :  { %v1059_v61 = vpop.f32.mrf.mxu0 }
 0x127   :  { %1102 = vmatmul.mubr.f32.vlgmr.msra.gmra.mxu1 %v425_v57  ;;  %1158 = vmatmul.mubr.f32.vlgmr.msra.gmra.mxu0 %v441_v58  ;;  %v430_v14 = vadd.f32 %v1059_v61, %v398_v7  ;;  %v446_v15 = vmul.f32 %v1059_v61, %v398_v7 }
 0x128   :  { %1197 = vmatpush3.msra.mxu1 %v1441_v17  ;;  %v310_v0 = vpop.f32.mrf.mxu0  ;;  %1104 = vmatprep.mubr.f32.mxu1 %v426_v59 }
 0x129   :  { %v428_v2 = vadd.f32 %v396_v62, %v310_v0  ;;  %1182 = vmatprep.subr.mxu1 %v1444_v21  ;;  %1160 = vmatprep.mubr.f32.mxu0 %v442_v63  ;;  %v444_v4 = vmul.f32 %v396_v62, %v310_v0 }
 0x12a   :  { %1198 = vmatpush3.msra.mxu1 %v1444_v21  ;;  %v1060_v5 = vpop.f32.mrf.mxu0  ;;  %v401_v21 = vld [vmem:[#allocation8 + $0x48] sm:$0xff] }
 0x12b   :  { %1183 = vmatprep.subr.mxu1 %v1447_v23  ;;  %1105 = vmatmul.mubr.f32.gmra.mxu1 %v427_v1  ;;  %v431_v17 = vadd.f32 %v1060_v5, %v399_v11  ;;  %v447_v19 = vmul.f32 %v1060_v5, %v399_v11 }
 0x12c   :  { %1199 = vmatpush3.msra.mxu1 %v1447_v23  ;;  %1161 = vmatmul.mubr.f32.gmra.mxu0 %v443_v3  ;;  %v313_v8 = vpop.f32.mrf.mxu0 }
 0x12d   :  { %v429_v9 = vadd.f32 %v397_v6, %v313_v8  ;;  %v445_v10 = vmul.f32 %v397_v6, %v313_v8  ;;  %1107 = vmatprep.mubr.f32.mxu1 %v428_v2  ;;  %1184 = vmatprep.subr.mxu1 %v1451_v25 }
 0x12e   :  { %1163 = vmatprep.mubr.f32.mxu0 %v444_v4  ;;  %1200 = vmatpush3.msra.mxu1 %v1451_v25  ;;  %v1513_v12 = vpop.f32.mrf.mxu0 }
 0x12f   :  { %1185 = vmatprep.subr.mxu1 %v1455_v29  ;;  %1108 = vmatmul.mubr.f32.gmra.mxu1 %v429_v9  ;;  %v434_v25 = vadd.f32 %v1513_v12, %v402_v22 }
 0x130   :  { %1201 = vmatpush3.msra.mxu1 %v1455_v29  ;;  %1164 = vmatmul.mubr.f32.gmra.mxu0 %v445_v10  ;;  %v326_v16 = vpop.f32.mrf.mxu0 }
 0x131   :  { %v432_v18 = vadd.f32 %v400_v13, %v326_v16  ;;  %1110 = vmatprep.mubr.f32.mxu1 %v430_v14  ;;  %1186 = vmatprep.subr.mxu1 %v1459_v30  ;;  %v448_v44 = vmul.f32 %v400_v13, %v326_v16 }
 0x132   :  { %1166 = vmatprep.mubr.f32.mxu0 %v446_v15  ;;  %1202 = vmatpush3.msra.mxu1 %v1459_v30  ;;  %v1064_v20 = vpop.f32.mrf.mxu0 }
 0x133   :  { %1187 = vmatprep.subr.mxu1 %v1463_v31  ;;  %1111 = vmatmul.mubr.f32.gmra.mxu1 %v431_v17  ;;  %v435_v30 = vadd.f32 %v1064_v20, %v403_v26 }
 0x134   :  { %1203 = vmatpush3.msra.mxu1 %v1463_v31  ;;  %1167 = vmatmul.mubr.f32.gmra.mxu0 %v447_v19  ;;  %v329_v23 = vpop.f32.mrf.mxu0 }
 0x135   :  { %v433_v24 = vadd.f32 %v401_v21, %v329_v23  ;;  %1113 = vmatprep.mubr.f32.mxu1 %v432_v18  ;;  %1188 = vmatprep.subr.mxu1 %v1467_v32 }
 0x136   :  { %1204 = vmatpush3.msra.mxu1 %v1467_v32  ;;  %v1067_v27 = vpop.f32.mrf.mxu0 }
 0x137   :  { %1189 = vmatprep.subr.mxu1 %v1471_v35  ;;  %1114 = vmatmul.mubr.f32.gmra.mxu1 %v433_v24  ;;  %v454_v48 = vmul.f32 %v1067_v27, %v406_v39 }
 0x138   :  { %1205 = vmatpush3.msra.mxu1 %v1471_v35  ;;  %v342_v29 = vpop.f32.mrf.mxu0  ;;  %1116 = vmatprep.mubr.f32.mxu1 %v434_v25  ;;  %v438_v35 = vadd.f32 %v1067_v27, %v406_v39 }
 0x139   :  { %v436_v31 = vadd.f32 %v404_v28, %v342_v29  ;;  %1190 = vmatprep.subr.mxu1 %v1475_v36  ;;  %v452_v46 = vmul.f32 %v404_v28, %v342_v29 }
 0x13a   :  { %1206 = vmatpush3.msra.mxu1 %v1475_v36  ;;  %v1068_v33 = vpop.f32.mrf.mxu0 }
 0x13b   :  { %1191 = vmatprep.subr.mxu1 %v1479_v37  ;;  %1117 = vmatmul.mubr.f32.gmra.mxu1 %v435_v30  ;;  %v439_v36 = vadd.f32 %v1068_v33, %v407_v42  ;;  %v455_v49 = vmul.f32 %v1068_v33, %v407_v42 }
 0x13c   :  { %1207 = vmatpush3.msra.mxu1 %v1479_v37  ;;  %v345_v32 = vpop.f32.mrf.mxu0  ;;  %1119 = vmatprep.mubr.f32.mxu1 %v436_v31  ;;  %v449_v37 = vmul.f32 %v401_v21, %v329_v23 }
 0x13d   :  { %v437_v40 = vadd.f32 %v405_v34, %v345_v32  ;;  %1192 = vmatprep.subr.mxu1 %v1483_v38 }
 0x13e   :  { %1208 = vmatpush3.msra.mxu1 %v1483_v38  ;;  %v450_v38 = vmul.f32 %v1513_v12, %v402_v22 }
 0x13f   :  { %1193 = vmatprep.subr.mxu1 %v1489_v41  ;;  %1120 = vmatmul.mubr.f32.gmra.mxu1 %v437_v40 }
 0x140   :  { %1209 = vmatpush3.msra.mxu1 %v1489_v41  ;;  %1122 = vmatprep.mubr.f32.mxu1 %v438_v35  ;;  %v451_v41 = vmul.f32 %v1064_v20, %v403_v26 }
 0x141   :  { %1194 = vmatprep.subr.mxu1 %v1493_v43 }
 0x142   :  { %1210 = vmatpush3.msra.mxu1 %v1493_v43  ;;  %v453_v43 = vmul.f32 %v405_v34, %v345_v32 }
 0x143   :  { %1195 = vmatprep.subr.mxu1 %v1497_v45  ;;  %1123 = vmatmul.mubr.f32.gmra.mxu1 %v439_v36 }
 0x144   :  { %1211 = vmatpush3.msra.mxu1 %v1497_v45  ;;  %1169 = vmatprep.mubr.f32.mxu1 %v448_v44  ;;  %v1544_v45 = vld [vmem:[%s1596_s4] ss:$0 sm:$0xff]  ;;  %s1376_s4 = smov [#allocation12]  }
 0x145   :  { %1196 = vmatprep.subr.mxu1 %v1501_v47 }
 0x146   :  { %1212 = vmatpush3.msra.mxu1 %v1501_v47  ;;  %v1549_v47 = vld [vmem:[%s1598_s6] ss:$0 sm:$0xff]  ;;  %s925_s6 = sshll.u32 %s1376_s4, 4  ;;  %s926_s6 = int_to_ptr.vmem [resolvable:$true] %s925_s6 }
 0x147   :  { %1170 = vmatmul.mubr.f32.vlgmr.msra.gmra.mxu1 %v449_v37  ;;  %s1339_s29 = scalar_lea.vmem %s926_s6, 2048  ;;  %p1344_p12 = scmp.lt.s32.totalorder %s926_s6, %s926_s6 }
 0x148   :  { %1172 = vmatprep.mubr.f32.mxu1 %v450_v38  ;;  %p1340_p11 = scmp.ne.s32.totalorder %s926_s6, %s1339_s29  ;;  %p1345_p13 = scmp.lt.s32.totalorder %s1339_s29, %s1339_s29 }
 0x14a   :  { %p1346_p0 = por %p1345_p13, %p1344_p12 }
 0x14b   :  { %1173 = vmatmul.mubr.f32.gmra.mxu1 %v451_v41 }
 0x14c   :  { %1175 = vmatprep.mubr.f32.mxu1 %v452_v46  ;;  %p1347_p1 = pnand %p1346_p0, %p1340_p11 }
 0x14f   :  { %1176 = vmatmul.mubr.f32.gmra.mxu1 %v453_v43 }
 0x150   :  { %1178 = vmatprep.mubr.f32.mxu1 %v454_v48 }
 0x153   :  { %1179 = vmatmul.mubr.f32.gmra.mxu1 %v455_v49 }
 0x1e7   :  { %v1103_v50 = vpop.f32.mrf.mxu1  ;;  %v1159_v51 = vpop.f32.mrf.mxu0 }
 0x1e8   :  { %v551_v52 = vadd.f32 %v1103_v50, %v1544_v45  ;;  %v719_v53 = vadd.f32 %v1159_v51, %v1549_v47 }
 0x1e9   :  { %v545_v54 = vpop.f32.mrf.mxu1  ;;  %v713_v55 = vpop.f32.mrf.mxu0 }
 0x1ea   :  { %vm793_vm0 = vcmp.ge.f32.partialorder %v551_v52, 0.0  ;;  %v809_v56 = vmul.f32 0.01, %v551_v52  ;;  %vm841_vm1 = vcmp.ge.f32.partialorder %v719_v53, 0.0  ;;  %v857_v57 = vmul.f32 0.01, %v719_v53 }
 0x1eb   :  { %v546_v58 = vadd.f32 %v1544_v45, %v545_v54  ;;  %v714_v59 = vadd.f32 %v1549_v47, %v713_v55  ;;  %v1106_v60 = vpop.f32.mrf.mxu1 }
 0x1ec   :  { %v825_v61 = vsel %vm793_vm0, %v551_v52, %v809_v56  ;;  %v873_v62 = vsel %vm841_vm1, %v719_v53, %v857_v57  ;;  %v561_v63 = vadd.f32 %v1106_v60, %v1544_v45  ;;  %v1162_v0 = vpop.f32.mrf.mxu0 }
 0x1ed   :  { %v889_v1 = vadd.f32 %v873_v62, %v825_v61  ;;  %vm792_vm2 = vcmp.ge.f32.partialorder %v546_v58, 0.0  ;;  %v808_v2 = vmul.f32 0.01, %v546_v58  ;;  %vm840_vm3 = vcmp.ge.f32.partialorder %v714_v59, 0.0  ;;  %v555_v3 = vpop.f32.mrf.mxu1 }
 0x1ee   :  { %v856_v4 = vmul.f32 0.01, %v714_v59  ;;  %vm795_vm4 = vcmp.ge.f32.partialorder %v561_v63, 0.0  ;;  %v811_v5 = vmul.f32 0.01, %v561_v63  ;;  %v729_v6 = vadd.f32 %v1162_v0, %v1549_v47  ;;  %v723_v7 = vpop.f32.mrf.mxu0 }
 0x1ef   :  { %905 = vst [vmem:[#allocation12 + $0x8] sm:$0xff] %v889_v1  ;;  %v824_v8 = vsel %vm792_vm2, %v546_v58, %v808_v2  ;;  %v556_v9 = vadd.f32 %v1544_v45, %v555_v3  ;;  %v724_v10 = vadd.f32 %v1549_v47, %v723_v7  ;;  %v1109_v11 = vpop.f32.mrf.mxu1 }
 0x1f0   :  { %v872_v12 = vsel %vm840_vm3, %v714_v59, %v856_v4  ;;  %v827_v13 = vsel %vm795_vm4, %v561_v63, %v811_v5  ;;  %vm843_vm5 = vcmp.ge.f32.partialorder %v729_v6, 0.0  ;;  %v859_v14 = vmul.f32 0.01, %v729_v6  ;;  %v1165_v15 = vpop.f32.mrf.mxu0 }
 0x1f1   :  { %v888_v16 = vadd.f32 %v872_v12, %v824_v8  ;;  %vm794_vm6 = vcmp.ge.f32.partialorder %v556_v9, 0.0  ;;  %v810_v17 = vmul.f32 0.01, %v556_v9  ;;  %vm842_vm7 = vcmp.ge.f32.partialorder %v724_v10, 0.0  ;;  %v565_v18 = vpop.f32.mrf.mxu1 }
 0x1f2   :  { %v875_v19 = vsel %vm843_vm5, %v729_v6, %v859_v14  ;;  %v858_v20 = vmul.f32 0.01, %v724_v10  ;;  %v571_v21 = vadd.f32 %v1109_v11, %v1544_v45  ;;  %v739_v22 = vadd.f32 %v1165_v15, %v1549_v47  ;;  %v733_v23 = vpop.f32.mrf.mxu0 }
 0x1f3   :  { %904 = vst [vmem:[#allocation12] sm:$0xff] %v888_v16  ;;  %v891_v24 = vadd.f32 %v875_v19, %v827_v13  ;;  %v826_v25 = vsel %vm794_vm6, %v556_v9, %v810_v17  ;;  %v566_v26 = vadd.f32 %v1544_v45, %v565_v18  ;;  %v734_v27 = vadd.f32 %v1549_v47, %v733_v23  ;;  %v1112_v28 = vpop.f32.mrf.mxu1 }
 0x1f4   :  { %v874_v29 = vsel %vm842_vm7, %v724_v10, %v858_v20  ;;  %vm797_vm8 = vcmp.ge.f32.partialorder %v571_v21, 0.0  ;;  %v813_v30 = vmul.f32 0.01, %v571_v21  ;;  %vm845_vm9 = vcmp.ge.f32.partialorder %v739_v22, 0.0  ;;  %v1168_v31 = vpop.f32.mrf.mxu0 }
 0x1f5   :  { %907 = vst [vmem:[#allocation12 + $0x18] sm:$0xff] %v891_v24  ;;  %v890_v33 = vadd.f32 %v874_v29, %v826_v25  ;;  %v861_v34 = vmul.f32 0.01, %v739_v22  ;;  %vm796_vm10 = vcmp.ge.f32.partialorder %v566_v26, 0.0  ;;  %v812_v39 = vmul.f32 0.01, %v566_v26  ;;  %v575_v32 = vpop.f32.mrf.mxu1 }
 0x1f6   :  { %v829_v40 = vsel %vm797_vm8, %v571_v21, %v813_v30  ;;  %vm844_vm11 = vcmp.ge.f32.partialorder %v734_v27, 0.0  ;;  %v860_v35 = vmul.f32 0.01, %v734_v27  ;;  %v581_v42 = vadd.f32 %v1112_v28, %v1544_v45  ;;  %v743_v41 = vpop.f32.mrf.mxu0 }
 0x1f7   :  { %906 = vst [vmem:[#allocation12 + $0x10] sm:$0xff] %v890_v33  ;;  %v877_v36 = vsel %vm845_vm9, %v739_v22, %v861_v34  ;;  %v828_v44 = vsel %vm796_vm10, %v566_v26, %v812_v39  ;;  %v749_v37 = vadd.f32 %v1168_v31, %v1549_v47  ;;  %v576_v38 = vadd.f32 %v1544_v45, %v575_v32  ;;  %v1115_v46 = vpop.f32.mrf.mxu1 }
 0x1f8   :  { %v893_v43 = vadd.f32 %v877_v36, %v829_v40  ;;  %v876_v48 = vsel %vm844_vm11, %v734_v27, %v860_v35  ;;  %vm799_vm12 = vcmp.ge.f32.partialorder %v581_v42, 0.0  ;;  %v815_v49 = vmul.f32 0.01, %v581_v42 }
 0x1f9   :  { %v892_v50 = vadd.f32 %v876_v48, %v828_v44  ;;  %vm847_vm13 = vcmp.ge.f32.partialorder %v749_v37, 0.0  ;;  %v863_v51 = vmul.f32 0.01, %v749_v37  ;;  %vm798_vm14 = vcmp.ge.f32.partialorder %v576_v38, 0.0  ;;  %v585_v52 = vpop.f32.mrf.mxu1 }
 0x1fa   :  { %909 = vst [vmem:[#allocation12 + $0x28] sm:$0xff] %v893_v43  ;;  %v831_v53 = vsel %vm799_vm12, %v581_v42, %v815_v49  ;;  %v814_v54 = vmul.f32 0.01, %v576_v38  ;;  %v744_v55 = vadd.f32 %v1549_v47, %v743_v41  ;;  %v591_v2 = vadd.f32 %v1115_v46, %v1544_v45 }
 0x1fb   :  { %908 = vst [vmem:[#allocation12 + $0x20] sm:$0xff] %v892_v50  ;;  %v879_v56 = vsel %vm847_vm13, %v749_v37, %v863_v51  ;;  %v1118_v57 = vpop.f32.mrf.mxu1  ;;  %v586_v3 = vadd.f32 %v1544_v45, %v585_v52 }
 0x1fc   :  { %v895_v58 = vadd.f32 %v879_v56, %v831_v53  ;;  %v830_v59 = vsel %vm798_vm14, %v576_v38, %v814_v54  ;;  %vm846_vm15 = vcmp.ge.f32.partialorder %v744_v55, 0.0  ;;  %v862_v60 = vmul.f32 0.01, %v744_v55 }
 0x1fd   :  { %v595_v61 = vpop.f32.mrf.mxu1  ;;  %v601_v5 = vadd.f32 %v1118_v57, %v1544_v45  ;;  %v817_v8 = vmul.f32 0.01, %v591_v2  ;;  %v816_v9 = vmul.f32 0.01, %v586_v3  ;;  %vm801_vm0 = vcmp.ge.f32.partialorder %v591_v2, 0.0 }
 0x1fe   :  { %911 = vst [vmem:[#allocation12 + $0x38] sm:$0xff] %v895_v58  ;;  %v878_v62 = vsel %vm846_vm15, %v744_v55, %v862_v60  ;;  %v596_v6 = vadd.f32 %v1544_v45, %v595_v61  ;;  %vm800_vm1 = vcmp.ge.f32.partialorder %v586_v3, 0.0 }
 0x1ff   :  { %v894_v63 = vadd.f32 %v878_v62, %v830_v59  ;;  %v1121_v0 = vpop.f32.mrf.mxu1  ;;  %vm803_vm2 = vcmp.ge.f32.partialorder %v601_v5, 0.0  ;;  %v819_v12 = vmul.f32 0.01, %v601_v5  ;;  %v833_v17 = vsel %vm801_vm0, %v591_v2, %v817_v8 }
 0x200   :  { %v818_v13 = vmul.f32 0.01, %v596_v6  ;;  %vm802_vm3 = vcmp.ge.f32.partialorder %v596_v6, 0.0  ;;  %v832_v18 = vsel %vm800_vm1, %v586_v3, %v816_v9  ;;  %v611_v19 = vadd.f32 %v1121_v0, %v1544_v45 }
 0x201   :  { %910 = vst [vmem:[#allocation12 + $0x30] sm:$0xff] %v894_v63  ;;  %v605_v1 = vpop.f32.mrf.mxu1  ;;  %v835_v24 = vsel %vm803_vm2, %v601_v5, %v819_v12 }
 0x202   :  { %v834_v25 = vsel %vm802_vm3, %v596_v6, %v818_v13  ;;  %v606_v26 = vadd.f32 %v1544_v45, %v605_v1  ;;  %vm805_vm7 = vcmp.ge.f32.partialorder %v611_v19, 0.0  ;;  %v821_v33 = vmul.f32 0.01, %v611_v19 }
 0x203   :  { %v1124_v4 = vpop.f32.mrf.mxu1 }
 0x204   :  { %v621_v34 = vadd.f32 %v1124_v4, %v1544_v45  ;;  %vm804_vm9 = vcmp.ge.f32.partialorder %v606_v26, 0.0  ;;  %v820_v36 = vmul.f32 0.01, %v606_v26  ;;  %v837_v48 = vsel %vm805_vm7, %v611_v19, %v821_v33 }
 0x205   :  { %v615_v7 = vpop.f32.mrf.mxu1 }
 0x206   :  { %v616_v44 = vadd.f32 %v1544_v45, %v615_v7  ;;  %v823_v49 = vmul.f32 0.01, %v621_v34  ;;  %v836_v45 = vsel %vm804_vm9, %v606_v26, %v820_v36  ;;  %vm807_vm12 = vcmp.ge.f32.partialorder %v621_v34, 0.0 }
 0x207   :  { %v1171_v10 = vpop.f32.mrf.mxu1 }
 0x208   :  { %v759_v11 = vadd.f32 %v1171_v10, %v1549_v47  ;;  %v822_v55 = vmul.f32 0.01, %v616_v44  ;;  %vm806_vm14 = vcmp.ge.f32.partialorder %v616_v44, 0.0  ;;  %v839_v62 = vsel %vm807_vm12, %v621_v34, %v823_v49 }
 0x209   :  { %v753_v14 = vpop.f32.mrf.mxu1 }
 0x20a   :  { %vm849_vm4 = vcmp.ge.f32.partialorder %v759_v11, 0.0  ;;  %v865_v15 = vmul.f32 0.01, %v759_v11  ;;  %v754_v16 = vadd.f32 %v1549_v47, %v753_v14  ;;  %v838_v2 = vsel %vm806_vm14, %v616_v44, %v822_v55 }
 0x20b   :  { %v1174_v20 = vpop.f32.mrf.mxu1 }
 0x20c   :  { %v881_v21 = vsel %vm849_vm4, %v759_v11, %v865_v15  ;;  %vm848_vm5 = vcmp.ge.f32.partialorder %v754_v16, 0.0  ;;  %v864_v22 = vmul.f32 0.01, %v754_v16  ;;  %v769_v23 = vadd.f32 %v1174_v20, %v1549_v47 }
 0x20d   :  { %v897_v27 = vadd.f32 %v881_v21, %v833_v17  ;;  %v763_v28 = vpop.f32.mrf.mxu1 }
 0x20e   :  { %v880_v29 = vsel %vm848_vm5, %v754_v16, %v864_v22  ;;  %vm851_vm6 = vcmp.ge.f32.partialorder %v769_v23, 0.0  ;;  %v867_v30 = vmul.f32 0.01, %v769_v23  ;;  %v764_v31 = vadd.f32 %v1549_v47, %v763_v28 }
 0x20f   :  { %913 = vst [vmem:[#allocation12 + $0x48] sm:$0xff] %v897_v27  ;;  %v896_v39 = vadd.f32 %v880_v29, %v832_v18  ;;  %v1177_v32 = vpop.f32.mrf.mxu1 }
 0x210   :  { %v883_v40 = vsel %vm851_vm6, %v769_v23, %v867_v30  ;;  %vm850_vm8 = vcmp.ge.f32.partialorder %v764_v31, 0.0  ;;  %v866_v35 = vmul.f32 0.01, %v764_v31  ;;  %v779_v42 = vadd.f32 %v1177_v32, %v1549_v47 }
 0x211   :  { %912 = vst [vmem:[#allocation12 + $0x40] sm:$0xff] %v896_v39  ;;  %v899_v37 = vadd.f32 %v883_v40, %v835_v24  ;;  %v773_v38 = vpop.f32.mrf.mxu1 }
 0x212   :  { %v882_v41 = vsel %vm850_vm8, %v764_v31, %v866_v35  ;;  %vm853_vm10 = vcmp.ge.f32.partialorder %v779_v42, 0.0  ;;  %v869_v46 = vmul.f32 0.01, %v779_v42  ;;  %v774_v43 = vadd.f32 %v1549_v47, %v773_v38 }
 0x213   :  { %915 = vst [vmem:[#allocation12 + $0x58] sm:$0xff] %v899_v37  ;;  %v898_v50 = vadd.f32 %v882_v41, %v834_v25  ;;  %v1180_v51 = vpop.f32.mrf.mxu1 }
 0x214   :  { %v885_v52 = vsel %vm853_vm10, %v779_v42, %v869_v46  ;;  %vm852_vm11 = vcmp.ge.f32.partialorder %v774_v43, 0.0  ;;  %v868_v53 = vmul.f32 0.01, %v774_v43  ;;  %v789_v54 = vadd.f32 %v1180_v51, %v1549_v47 }
 0x215   :  { %914 = vst [vmem:[#allocation12 + $0x50] sm:$0xff] %v898_v50  ;;  %v901_v56 = vadd.f32 %v885_v52, %v837_v48  ;;  %v783_v57 = vpop.f32.mrf.mxu1 }
 0x216   :  { %v884_v58 = vsel %vm852_vm11, %v774_v43, %v868_v53  ;;  %vm855_vm13 = vcmp.ge.f32.partialorder %v789_v54, 0.0  ;;  %v871_v59 = vmul.f32 0.01, %v789_v54  ;;  %v784_v60 = vadd.f32 %v1549_v47, %v783_v57 }
 0x217   :  { %917 = vst [vmem:[#allocation12 + $0x68] sm:$0xff] %v901_v56  ;;  %v900_v61 = vadd.f32 %v884_v58, %v836_v45 }
 0x218   :  { %v887_v63 = vsel %vm855_vm13, %v789_v54, %v871_v59  ;;  %vm854_vm15 = vcmp.ge.f32.partialorder %v784_v60, 0.0  ;;  %v870_v0 = vmul.f32 0.01, %v784_v60 }
 0x219   :  { %916 = vst [vmem:[#allocation12 + $0x60] sm:$0xff] %v900_v61  ;;  %v903_v1 = vadd.f32 %v887_v63, %v839_v62 }
 0x21a   :  { %v886_v3 = vsel %vm854_vm15, %v784_v60, %v870_v0 }
 0x21b   :  { %919 = vst [vmem:[#allocation12 + $0x78] sm:$0xff] %v903_v1  ;;  %v902_v4 = vadd.f32 %v886_v3, %v838_v2 }
 0x21d   :  { %918 = vst [vmem:[#allocation12 + $0x70] sm:$0xff] %v902_v4 }
 0x21e   :  { %1350 = shalt.err (!%p1347_p1)
}
 0x21f   :  { %931 = dma.vmem_to_hbm [thread:$0]  %s926_s6, 2048, %s1599_s7, [#allocation5], %s1372_s13, %s1372_s13, %s1373_s14  }
 0x220   :  { %1365 = dma.done.wait [#allocation5], 2048  }
 0x221   :  { %1366 = vsyncadd [#allocation5], 4294965248 }
 0x222   :  { %935 = vsyncpa [#allocation4], 1 }
 0x223   :  { %936 = vsyncpa [#allocation7], 1 }
 0x224   :  { %937 = vsyncpa [#allocation10], 1 }
 0x225   :  { %938 = vsyncpa [#allocation5], 1 }

</bundles_post_ra>
